<compile_context>
chip_gen: v7x
topology: tpu7x:2x2x1
jax: 0.10.0
libtpu: 0.0.40
codegen_flags: <defaults>
</compile_context>

<pallas_src>
import functools

import jax
import jax.numpy as jnp
from jax import lax
from jax.experimental import pallas as pl
from jax.experimental.pallas import tpu as pltpu

_NEG_BIG = -1e30  # finite "minus infinity" for padded vocab columns (avoids inf-inf NaNs)


def _round_up(x, m):
    return (x + m - 1) // m * m


def _vmem_limit_bytes():
    """Generation-aware scoped-VMEM cap: ~3/4 of physical (64 MiB on v7x,
    128 MiB on v5e/v6e), clamped to [32 MiB, 100 MiB]."""
    cap = 64 * 1024 * 1024  # conservative fallback = v7x physical
    try:
        cap = int(pltpu.get_tpu_info().vmem_capacity_bytes)
    except Exception:
        pass
    return int(max(32 * 1024 * 1024, min(cap * 3 // 4, 100 * 1024 * 1024)))


def _tiling(n, c_pad, vmem_limit_bytes):
    """Pick a token tile (multiple of 8) and the padded token count.

    Tile is sized from the VMEM budget: the logits block is double-buffered and
    the one-hot / CE temporaries add roughly 2x more, so ~16*c_pad bytes per row.
    """
    per_row = 16 * c_pad
    tile_n_max = (vmem_limit_bytes // 2) // per_row
    tile_n_max = max(8, min(2048, (tile_n_max // 8) * 8))
    if n > tile_n_max:
        tile_n = tile_n_max
        n_pad = _round_up(n, tile_n)
    elif n >= 512:
        # Enough work to split into 2 blocks -> feeds both v7x TensorCores.
        tile_n = _round_up(-(-n // 2), 8)
        n_pad = 2 * tile_n
    else:
        tile_n = _round_up(n, 8)
        n_pad = tile_n
    return tile_n, n_pad


# ---------------------------------------------------------------------------
# Kernels
# ---------------------------------------------------------------------------

def _onehot_logits(idx_ref, w_ref):
    """logits[n, :] = W[idx[n], :] via an exact f32 one-hot MXU matmul."""
    ids = idx_ref[...]                                        # (tile_n, 1) int32
    tile_n = ids.shape[0]
    k_pad = w_ref.shape[0]
    lane = lax.broadcasted_iota(jnp.int32, (tile_n, k_pad), 1)
    onehot = (lane == ids).astype(jnp.float32)                # exact 0.0 / 1.0
    # Keep both operands f32 so the "embedding lookup" is exact.
    return jnp.dot(onehot, w_ref[...], preferred_element_type=jnp.float32)


def _bigram_logits_kernel(idx_ref, w_ref, logits_ref):
    """Inference path: embedding gather only (no cross-entropy tail)."""
    logits_ref[...] = _onehot_logits(idx_ref, w_ref).astype(logits_ref.dtype)


def _bigram_loss_kernel(idx_ref, tgt_ref, w_ref, *out_refs, n_valid):
    """Training path: gather + per-row CE + in-kernel per-block loss reduction.

    out_refs is (logits_ref, loss_ref) or (loss_ref,) (loss-only variant).
    """
    if len(out_refs) == 2:
        logits_ref, loss_ref = out_refs
    else:
        (loss_ref,) = out_refs
        logits_ref = None

    logits = _onehot_logits(idx_ref, w_ref)                   # (tile_n, c_pad) f32
    if logits_ref is not None:
        logits_ref[...] = logits.astype(logits_ref.dtype)

    tile_n, c_pad = logits.shape

    # Padded class columns are already baked to -1e30 in W: no extra mask pass.
    row_max = jnp.max(logits, axis=-1, keepdims=True)         # (tile_n, 1)
    shifted = logits - row_max
    sum_exp = jnp.sum(jnp.exp(shifted), axis=-1, keepdims=True)

    tgt = tgt_ref[...]                                        # (tile_n, 1) int32
    lane = lax.broadcasted_iota(jnp.int32, (tile_n, c_pad), 1)
    tgt_shifted = jnp.sum(jnp.where(lane == tgt, shifted, 0.0),
                          axis=-1, keepdims=True)             # target logit (shifted)

    loss_rows = jnp.log(sum_exp) - tgt_shifted                # per-row CE

    # Mask padded token rows so the in-kernel partial sum is unbiased.
    base = pl.program_id(0) * tile_n
    row = base + lax.broadcasted_iota(jnp.int32, (tile_n, 1), 0)
    loss_rows = jnp.where(row < n_valid, loss_rows, 0.0)

    partial = jnp.sum(loss_rows)                              # scalar per block
    loss_ref[...] = jnp.broadcast_to(partial, loss_ref.shape).astype(loss_ref.dtype)


# ---------------------------------------------------------------------------
# Host-side wrappers
# ---------------------------------------------------------------------------

def prepare_bigram_params(embedding_table):
    """Pad the embedding table ONCE (reuse across forward calls).

    Rows (num_embeddings, MXU contraction dim) and columns (classes, lane dim)
    are padded to multiples of 128; padded class columns are baked to -1e30 so
    the cross-entropy kernel needs no in-kernel column mask.
    """
    V, C = embedding_table.shape
    k_pad = _round_up(V, 128)
    c_pad = _round_up(C, 128)
    w_pad = jnp.zeros((k_pad, c_pad), jnp.float32)
    w_pad = w_pad.at[:V, :C].set(embedding_table.astype(jnp.float32))
    if c_pad > C:
        w_pad = w_pad.at[:, C:].set(_NEG_BIG)
    return {"w_pad": w_pad, "num_embeddings": V, "num_classes": C}


def bigram_forward(idx, params, targets=None, *, return_logits=True):
    """Mirror of BigramLanguageModel.forward.

    idx:     (B, T) int token ids
    targets: (B, T) int token ids or None
    returns: (logits, loss); logits (B, T, C) if targets is None, else
             logits (B*T, C) (matching the PyTorch .view) and scalar mean loss.
             With return_logits=False in the training path, logits is None and
             the full-logits HBM writeback is skipped.
    """
    w_pad = params["w_pad"]
    C = params["num_classes"]
    k_pad, c_pad = w_pad.shape

    B, T = idx.shape
    N = B * T

    vmem_limit = _vmem_limit_bytes()
    tile_n, n_pad = _tiling(N, c_pad, vmem_limit)
    num_blocks = n_pad // tile_n

    idx_pad = jnp.zeros((n_pad, 1), jnp.int32)
    idx_pad = idx_pad.at[:N, 0].set(idx.reshape(N).astype(jnp.int32))

    w_spec = pl.BlockSpec((k_pad, c_pad), lambda i: (0, 0))          # resident table
    idx_spec = pl.BlockSpec((tile_n, 1), lambda i: (i, 0))
    logits_spec = pl.BlockSpec((tile_n, c_pad), lambda i: (i, 0))

    cparams = pltpu.CompilerParams(
        dimension_semantics=("parallel",),
        vmem_limit_bytes=vmem_limit,
    )

    if targets is None:
        logits_pad = pl.pallas_call(
            _bigram_logits_kernel,
            out_shape=jax.ShapeDtypeStruct((n_pad, c_pad), jnp.float32),
            grid=(num_blocks,),
            in_specs=[idx_spec, w_spec],
            out_specs=logits_spec,
            compiler_params=cparams,
        )(idx_pad, w_pad)
        logits = logits_pad[:N, :C].reshape(B, T, C)
        return logits, None

    tgt_pad = jnp.zeros((n_pad, 1), jnp.int32)
    tgt_pad = tgt_pad.at[:N, 0].set(targets.reshape(N).astype(jnp.int32))
    tgt_spec = pl.BlockSpec((tile_n, 1), lambda i: (i, 0))

    # Per-block partial loss: one lane-dense (8, 128) block per grid step.
    loss_spec = pl.BlockSpec((8, 128), lambda i: (i, 0))
    loss_shape = jax.ShapeDtypeStruct((num_blocks * 8, 128), jnp.float32)

    kernel = functools.partial(_bigram_loss_kernel, n_valid=N)

    if return_logits:
        out_shape = (jax.ShapeDtypeStruct((n_pad, c_pad), jnp.float32), loss_shape)
        out_specs = (logits_spec, loss_spec)
    else:
        out_shape = loss_shape
        out_specs = loss_spec

    outs = pl.pallas_call(
        kernel,
        out_shape=out_shape,
        grid=(num_blocks,),
        in_specs=[idx_spec, tgt_spec, w_spec],
        out_specs=out_specs,
        compiler_params=cparams,
    )(idx_pad, tgt_pad, w_pad)

    if return_logits:
        logits_pad, loss_blocks = outs
        logits = logits_pad[:N, :C]          # PyTorch views logits as (B*T, C)
    else:
        loss_blocks = outs
        logits = None

    # Each block wrote its partial sum (broadcast over its 8x128 tile).
    partials = loss_blocks.reshape(num_blocks, 8, 128)[:, 0, 0]
    loss = jnp.sum(partials) / N             # mean over the N valid rows
    return logits, loss


def _reference(idx, table, targets):
    logits = table[idx]                       # (B, T, C)
    B, T, Cc = logits.shape
    lf = logits.reshape(B * T, Cc)
    tf = targets.reshape(B * T)
    logp = jax.nn.log_softmax(lf, axis=-1)
    loss = -jnp.mean(logp[jnp.arange(B * T), tf])
    return lf, loss


if __name__ == "__main__":
    # Small shapes: vocab_size = 65 (char-level), batch = 2, seq = 8.
    vocab_size = 65
    B, T = 2, 8

    key = jax.random.PRNGKey(0)
    k_w, k_idx, k_tgt = jax.random.split(key, 3)
    # nn.Embedding default init: N(0, 1)
    embedding_table = jax.random.normal(k_w, (vocab_size, vocab_size), jnp.float32)
    idx = jax.random.randint(k_idx, (B, T), 0, vocab_size, jnp.int32)
    targets = jax.random.randint(k_tgt, (B, T), 0, vocab_size, jnp.int32)

    params = prepare_bigram_params(embedding_table)   # pad once, reuse every forward

    # Training path (logits + loss), matches PyTorch forward(idx, targets).
    logits, loss = bigram_forward(idx, params, targets)
    logits = jax.block_until_ready(logits)
    loss = jax.block_until_ready(loss)

    ref_logits, ref_loss = _reference(idx, embedding_table, targets)
    assert logits.shape == (B * T, vocab_size)
    assert jnp.allclose(logits, ref_logits, atol=1e-5, rtol=1e-5)
    assert jnp.allclose(loss, ref_loss, atol=1e-5, rtol=1e-5)

    # targets=None path (used by generate): logits (B, T, V), no CE tail run.
    logits_nt, loss_nt = bigram_forward(idx, params, None)
    logits_nt = jax.block_until_ready(logits_nt)
    assert logits_nt.shape == (B, T, vocab_size)
    assert loss_nt is None
    assert jnp.allclose(logits_nt, embedding_table[idx], atol=1e-5, rtol=1e-5)

    # Loss-only training path: skips the (N, V) f32 logits HBM writeback.
    no_logits, loss_only = bigram_forward(idx, params, targets, return_logits=False)
    loss_only = jax.block_until_ready(loss_only)
    assert no_logits is None
    assert jnp.allclose(loss_only, ref_loss, atol=1e-5, rtol=1e-5)

    # TODO(synk): generate()'s torch.multinomial sampling loop is host-side control
    # flow; it is not implemented as a kernel (the logits kernel above feeds it).
    print("KERNEL_OK")
</pallas_src>

<mosaic_0001>
module attributes {stable_mosaic.version = 11 : i64} {
  func.func @_bigram_loss_kernel(%arg0: i32, %arg1: memref<16x1xi32, #tpu.memory_space<vmem>>, %arg2: memref<16x1xi32, #tpu.memory_space<vmem>>, %arg3: memref<128x128xf32, #tpu.memory_space<vmem>>, %arg4: memref<16x128xf32, #tpu.memory_space<vmem>>, %arg5: memref<8x128xf32, #tpu.memory_space<vmem>>) attributes {dimension_semantics = [#tpu.dimension_semantics<parallel>], iteration_bounds = array<i64: 1>, scalar_prefetch = 0 : i64, scratch_operands = 0 : i64, tpu.core_type = #tpu.core_type<tc>, window_params = [{transform_indices = @transform_0, window_bounds = array<i64: 16, 1>}, {transform_indices = @transform_1, window_bounds = array<i64: 16, 1>}, {pipeline_mode = #tpu.pipeline_mode<synchronous>, transform_indices = @transform_2, window_bounds = array<i64: 128, 128>}, {transform_indices = @transform_3, window_bounds = array<i64: 16, 128>}, {transform_indices = @transform_4, window_bounds = array<i64: 8, 128>}]} {
    %c0 = arith.constant 0 : index
    %c0_0 = arith.constant 0 : index
    %0 = vector.load %arg1[%c0, %c0_0] : memref<16x1xi32, #tpu.memory_space<vmem>>, vector<16x1xi32>
    %1 = tpu.iota {dimensions = array<i32: 1>} : vector<16x128xi32>
    %2 = vector.broadcast %0 : vector<16x1xi32> to vector<16x128xi32>
    %3 = arith.cmpi eq, %1, %2 : vector<16x128xi32>
    %4 = arith.extui %3 : vector<16x128xi1> to vector<16x128xi32>
    %5 = arith.sitofp %4 : vector<16x128xi32> to vector<16x128xf32>
    %c0_1 = arith.constant 0 : index
    %c0_2 = arith.constant 0 : index
    %6 = vector.load %arg3[%c0_1, %c0_2] : memref<128x128xf32, #tpu.memory_space<vmem>>, vector<128x128xf32>
    %cst = arith.constant dense<0.000000e+00> : vector<16x128xf32>
    %7 = tpu.matmul %5, %6, %cst {dimension_numbers = #tpu.dot_dimension_numbers<[1], [0], [0], [1], [0, 0, 1, 1], [], []>} : vector<16x128xf32>, vector<128x128xf32>, vector<16x128xf32> -> vector<16x128xf32>
    %c0_3 = arith.constant 0 : index
    %c0_4 = arith.constant 0 : index
    %8 = vector.load %arg4[%c0_3, %c0_4] : memref<16x128xf32, #tpu.memory_space<vmem>>, vector<16x128xf32>
    tpu.vector_store %arg4[%c0_3, %c0_4], %7 {strides = array<i32>} : memref<16x128xf32, #tpu.memory_space<vmem>>, vector<16x128xf32>,
    %cst_5 = arith.constant dense<0xFF800000> : vector<16xf32>
    %9 = vector.multi_reduction <maximumf>, %7, %cst_5 [1] : vector<16x128xf32> to vector<16xf32>
    %10 = vector.shape_cast %9 : vector<16xf32> to vector<16x1xf32>
    %11 = vector.broadcast %10 : vector<16x1xf32> to vector<16x128xf32>
    %12 = arith.subf %7, %11 : vector<16x128xf32>
    %13 = math.exp %12 : vector<16x128xf32>
    %cst_6 = arith.constant dense<0.000000e+00> : vector<16xf32>
    %14 = vector.multi_reduction <add>, %13, %cst_6 [1] : vector<16x128xf32> to vector<16xf32>
    %15 = vector.shape_cast %14 : vector<16xf32> to vector<16x1xf32>
    %c0_7 = arith.constant 0 : index
    %c0_8 = arith.constant 0 : index
    %16 = vector.load %arg2[%c0_7, %c0_8] : memref<16x1xi32, #tpu.memory_space<vmem>>, vector<16x1xi32>
    %17 = tpu.iota {dimensions = array<i32: 1>} : vector<16x128xi32>
    %18 = vector.broadcast %16 : vector<16x1xi32> to vector<16x128xi32>
    %19 = arith.cmpi eq, %17, %18 : vector<16x128xi32>
    %cst_9 = arith.constant 0.000000e+00 : f32
    %20 = vector.broadcast %cst_9 : f32 to vector<16x128xf32>
    %21 = arith.select %19, %12, %20 : vector<16x128xi1>, vector<16x128xf32>
    %cst_10 = arith.constant dense<0.000000e+00> : vector<16xf32>
    %22 = vector.multi_reduction <add>, %21, %cst_10 [1] : vector<16x128xf32> to vector<16xf32>
    %23 = vector.shape_cast %22 : vector<16xf32> to vector<16x1xf32>
    %24 = math.log %15 : vector<16x1xf32>
    %25 = arith.subf %24, %23 : vector<16x1xf32>
    %c16_i32 = arith.constant 16 : i32
    %26 = arith.muli %arg0, %c16_i32 : i32
    %27 = tpu.iota {dimensions = array<i32: 0>} : vector<16x1xi32>
    %28 = vector.broadcast %26 : i32 to vector<16x1xi32>
    %29 = arith.addi %28, %27 : vector<16x1xi32>
    %c16_i32_11 = arith.constant 16 : i32
    %30 = vector.broadcast %c16_i32_11 : i32 to vector<16x1xi32>
    %31 = arith.cmpi slt, %29, %30 : vector<16x1xi32>
    %cst_12 = arith.constant 0.000000e+00 : f32
    %32 = vector.broadcast %cst_12 : f32 to vector<16x1xf32>
    %33 = arith.select %31, %25, %32 : vector<16x1xi1>, vector<16x1xf32>
    %34 = vector.shape_cast %33 : vector<16x1xf32> to vector<1x16x1xf32>
    %cst_13 = arith.constant dense<0.000000e+00> : vector<1xf32>
    %35 = vector.multi_reduction <add>, %34, %cst_13 [1, 2] : vector<1x16x1xf32> to vector<1xf32>
    %36 = vector.shape_cast %35 : vector<1xf32> to vector<1x1x1xf32>
    %37 = vector.extract %36[0, 0, 0] : f32 from vector<1x1x1xf32>
    %38 = vector.broadcast %37 : f32 to vector<8x128xf32>
    %c0_14 = arith.constant 0 : index
    %c0_15 = arith.constant 0 : index
    %39 = vector.load %arg5[%c0_14, %c0_15] : memref<8x128xf32, #tpu.memory_space<vmem>>, vector<8x128xf32>
    tpu.vector_store %arg5[%c0_14, %c0_15], %38 {strides = array<i32>} : memref<8x128xf32, #tpu.memory_space<vmem>>, vector<8x128xf32>,
    return
  }
  func.func @transform_0(%arg0: i32) -> (i32, i32) {
    %c0_i32 = arith.constant 0 : i32
    %c0_i32_0 = arith.constant 0 : i32
    return %arg0, %c0_i32 : i32, i32
  }
  func.func @transform_1(%arg0: i32) -> (i32, i32) {
    %c0_i32 = arith.constant 0 : i32
    %c0_i32_0 = arith.constant 0 : i32
    return %arg0, %c0_i32 : i32, i32
  }
  func.func @transform_2(%arg0: i32) -> (i32, i32) {
    %c0_i32 = arith.constant 0 : i32
    %c0_i32_0 = arith.constant 0 : i32
    %c0_i32_1 = arith.constant 0 : i32
    return %c0_i32, %c0_i32_0 : i32, i32
  }
  func.func @transform_3(%arg0: i32) -> (i32, i32) {
    %c0_i32 = arith.constant 0 : i32
    %c0_i32_0 = arith.constant 0 : i32
    return %arg0, %c0_i32 : i32, i32
  }
  func.func @transform_4(%arg0: i32) -> (i32, i32) {
    %c0_i32 = arith.constant 0 : i32
    %c0_i32_0 = arith.constant 0 : i32
    return %arg0, %c0_i32 : i32, i32
  }
}

</mosaic_0001>

<bundles_post_ra>
// kernel: tpu_custom_call.1
= control target key start
LH: loop header
LB: loop body
LE: loop exit
PB: predicated region body
PF: predicated region fallthrough
CT: control target
= control target key end

     0   :  { %10 = vsyncpa [#allocation3], 0  ;;  %s500_s0 = inlined_call_operand.vmem [shape: s32[16,1], index: 0, kind: input, shape index: {}]   ;;  %s501_s1 = inlined_call_operand.vmem [shape: s32[16,1], index: 1, kind: input, shape index: {}]   ;;  %s502_s2 = inlined_call_operand.hbm [shape: f32[128,128], index: 2, kind: input, shape index: {}]   ;;  %s503_s3 = inlined_call_operand.hbm [shape: f32[16,128], index: 3, kind: output, shape index: {0}]   ;;  %s504_s4 = inlined_call_operand.hbm [shape: f32[8,128], index: 4, kind: output, shape index: {1}]  }
   0x1   :  { %11 = vsyncpa [#allocation4], 0 }
   0x2   :  { %12 = vsyncpa [#allocation7], 0  ;;  %s414_s15 = smov [#allocation2]   ;;  %s342_s19 = scalar_lea.hbm %s502_s2, 2048 }
   0x3   :  { %s22_s16 = sshll.u32 %s414_s15, 4  ;;  %p343_p0 = scmp.ne.s32.totalorder %s502_s2, %s342_s19  ;;  %s23_s16 = int_to_ptr.vmem [resolvable:$true] %s22_s16 }
   0x4   :  { %p346_p1 = scmp.lt.u32.totalorder %s342_s19, %s502_s2 }
   0x6   :  { %p348_p2 = pnand %p346_p1, %p343_p0 }
   0x8   :  { %351 = shalt.err (!%p348_p2)
}
   0x9   :  { %s352_s24 = scalar_lea.vmem %s23_s16, 2048  ;;  %p357_p4 = scmp.lt.s32.totalorder %s23_s16, %s23_s16 }
   0xa   :  { %p353_p3 = scmp.ne.s32.totalorder %s23_s16, %s352_s24  ;;  %p358_p5 = scmp.lt.s32.totalorder %s352_s24, %s352_s24 }
   0xc   :  { %p359_p6 = por %p358_p5, %p357_p4 }
   0xe   :  { %p360_p7 = pnand %p359_p6, %p353_p3 }
  0x10   :  { %363 = shalt.err (!%p360_p7)
}
  0x11   :  { %s415_s25 = smov 128   ;;  %s416_s26 = smov 8  }
  0x12   :  { %28 = dma.hbm_to_vmem [thread:$0]  %s502_s2, 2048, %s23_s16, [#allocation3], %s415_s25, %s415_s25, %s416_s26  }
  0x13   :  { %408 = dma.done.wait [#allocation3], 2048  }
  0x14   :  { %409 = vsyncadd [#allocation3], 4294965248  ;;  %v417_v0 = vmov 0   ;;  %v32_v1 = vld [vmem:[%s500_s0] sm:$0xff]  ;;  %v49_v3 = vld [vmem:[#allocation2 + $0x8] sm:$0xff]  ;;  %v34_v28 = vlaneseq  ;;  %v418_v31 = vmov 1.0  }
  0x15   :  { %332 = vset.pattern.permute.xlu0 %v417_v0  ;;  %333 = vset.pattern.permute.xlu1 %v417_v0  ;;  %v48_v2 = vld [vmem:[#allocation2] sm:$0xff]  ;;  %v50_v4 = vld [vmem:[#allocation2 + $0x10] sm:$0xff]  ;;  %v33_v5 = vld [vmem:[%s500_s0 + $0x8] sm:$0xff]  ;;  %vm188_vm4 = vcmask 7168  }
  0x16   :  { %37 = vperm.xlu0 %332, %v32_v1   ;;  %v291_v6 = vpack.c.bf16 %v49_v3, %v48_v2  ;;  %v51_v7 = vld [vmem:[#allocation2 + $0x18] sm:$0xff]  ;;  %v52_v9 = vld [vmem:[#allocation2 + $0x20] sm:$0xff]  ;;  %v53_v10 = vld [vmem:[#allocation2 + $0x28] sm:$0xff]  ;;  %v35_v29 = vand.u32 127, %v34_v28 }
  0x17   :  { %v295_v8 = vpack.c.bf16 %v51_v7, %v50_v4  ;;  %v155_v11 = vld [vmem:[%s501_s1] sm:$0xff]  ;;  %v299_v12 = vpack.c.bf16 %v53_v10, %v52_v9  ;;  %v54_v13 = vld [vmem:[#allocation2 + $0x30] sm:$0xff]  ;;  %v55_v14 = vld [vmem:[#allocation2 + $0x38] sm:$0xff] }
  0x18   :  { %292 = vmatprep.subr.bf16.mxu0 %v291_v6  ;;  %v303_v15 = vpack.c.bf16 %v55_v14, %v54_v13  ;;  %v56_v16 = vld [vmem:[#allocation2 + $0x40] sm:$0xff]  ;;  %v57_v17 = vld [vmem:[#allocation2 + $0x48] sm:$0xff]  ;;  %v58_v19 = vld [vmem:[#allocation2 + $0x50] sm:$0xff] }
  0x19   :  { %294 = vmatpush3.bf16.msra.mxu0 %v291_v6  ;;  %v307_v18 = vpack.c.bf16 %v57_v17, %v56_v16  ;;  %v59_v20 = vld [vmem:[#allocation2 + $0x58] sm:$0xff]  ;;  %v60_v22 = vld [vmem:[#allocation2 + $0x60] sm:$0xff]  ;;  %v61_v23 = vld [vmem:[#allocation2 + $0x68] sm:$0xff] }
  0x1a   :  { %40 = vperm.xlu0 %332, %v33_v5   ;;  %296 = vmatprep.subr.bf16.mxu0 %v295_v8  ;;  %v311_v21 = vpack.c.bf16 %v59_v20, %v58_v19  ;;  %v315_v24 = vpack.c.bf16 %v61_v23, %v60_v22  ;;  %v62_v25 = vld [vmem:[#allocation2 + $0x70] sm:$0xff]  ;;  %v63_v26 = vld [vmem:[#allocation2 + $0x78] sm:$0xff]  ;;  %v156_v35 = vld [vmem:[%s501_s1 + $0x8] sm:$0xff]  ;;  %s419_s1 = smov [#allocation5]  }
  0x1b   :  { %v319_v27 = vpack.c.bf16 %v63_v26, %v62_v25  ;;  %s208_s9 = sshll.u32 %s419_s1, 4  ;;  %s209_s9 = int_to_ptr.vmem [resolvable:$true] %s208_s9 }
  0x1c   :  { %s364_s10 = scalar_lea.vmem %s209_s9, 256  ;;  %p369_p9 = scmp.lt.s32.totalorder %s209_s9, %s209_s9 }
  0x1d   :  { %298 = vmatpush3.bf16.msra.mxu0 %v295_v8  ;;  %p365_p8 = scmp.ne.s32.totalorder %s209_s9, %s364_s10  ;;  %p370_p10 = scmp.lt.s32.totalorder %s364_s10, %s364_s10 }
  0x1e   :  { %158 = vperm.xlu0 %332, %v155_v11   ;;  %300 = vmatprep.subr.bf16.mxu0 %v299_v12 }
  0x1f   :  { %p371_p11 = por %p370_p10, %p369_p9 }
  0x21   :  { %302 = vmatpush3.bf16.msra.mxu0 %v299_v12  ;;  %p372_p12 = pnand %p371_p11, %p365_p8 }
  0x22   :  { %304 = vmatprep.subr.bf16.mxu0 %v303_v15 }
  0x25   :  { %306 = vmatpush3.bf16.msra.mxu0 %v303_v15 }
  0x26   :  { %308 = vmatprep.subr.bf16.mxu0 %v307_v18 }
  0x29   :  { %310 = vmatpush3.bf16.msra.mxu0 %v307_v18 }
  0x2a   :  { %312 = vmatprep.subr.bf16.mxu0 %v311_v21 }
  0x2d   :  { %314 = vmatpush3.bf16.msra.mxu0 %v311_v21 }
  0x2e   :  { %316 = vmatprep.subr.bf16.mxu0 %v315_v24 }
  0x31   :  { %318 = vmatpush3.bf16.msra.mxu0 %v315_v24 }
  0x32   :  { %320 = vmatprep.subr.bf16.mxu0 %v319_v27 }
  0x35   :  { %322 = vmatpush3.bf16.msra.mxu0 %v319_v27 }
  0x95   :  { %v38_v30 = vpop.permute.xlu0 %37 }
  0x96   :  { %vm42_vm0 = vcmp.eq.s32.totalorder %v35_v29, %v38_v30 }
  0x97   :  { %288 = vmatprep.mubr.msk.f32.mxu0 %vm42_vm0, %v418_v31 }
  0x99   :  { %v41_v32 = vpop.permute.xlu0 %40 }
  0x9a   :  { %vm43_vm1 = vcmp.eq.s32.totalorder %v35_v29, %v41_v32 }
  0x9b   :  { %289 = vmatmul.mubr.msk.f32.vlgmr.msra.gmra.mrb[0].mxu0 %vm43_vm1, %v418_v31 }
  0x9d   :  { %v159_v44 = vpop.permute.xlu0 %158 }
  0x9e   :  { %vm163_vm2 = vcmp.eq.s32.totalorder %v35_v29, %v159_v44 }
 0x16e   :  { %v290_v33 = vpop.f32.mrb[0].mxu0 }
 0x16f   :  { %140 = vst [vmem:[#allocation5 + $0x8] sm:$0xff] %v290_v33  ;;  %143 = vmax.xlane.f32.xlu1 %v290_v33  ;;  %v130_v34 = vpop.f32.mrb[1].mxu0 }
 0x170   :  { %139 = vst [vmem:[#allocation5] sm:$0xff] %v130_v34 }
 0x173   :  { %141 = vmax.xlane.f32.xlu1 %v130_v34 }
 0x184   :  { %161 = vperm.xlu1 %333, %v156_v35  }
 0x1fc   :  { %v144_v36 = vpop.xlane.xlu1 %143 }
 0x1fd   :  { %v146_v37 = vsub.f32 %v290_v33, %v144_v36 }
 0x1ff   :  { %v149_v38 = vmul.f32 1.442695, %v146_v37 }
 0x200   :  { %v142_v39 = vpop.xlane.xlu1 %141 }
 0x201   :  { %334 = vpow2.f32 %v149_v38  ;;  %v145_v40 = vsub.f32 %v130_v34, %v142_v39 }
 0x203   :  { %v147_v41 = vmul.f32 1.442695, %v145_v40  ;;  %v165_v46 = vsel %vm163_vm2, %v145_v40, 0.0 }
 0x204   :  { %v162_v45 = vpop.permute.xlu1 %161 }
 0x205   :  { %336 = vpow2.f32 %v147_v41  ;;  %vm164_vm3 = vcmp.eq.s32.totalorder %v35_v29, %v162_v45 }
 0x206   :  { %v166_v47 = vsel %vm164_vm3, %v146_v37, 0.0 }
 0x20b   :  { %v335_v42 = vpop.eup %334 }
 0x20c   :  { %153 = vadd.xlane.f32.xlu1 %v335_v42 }
 0x20f   :  { %v337_v43 = vpop.eup %336 }
 0x210   :  { %151 = vadd.xlane.f32.xlu0 %v337_v43 }
 0x214   :  { %167 = vadd.xlane.f32.xlu0 %v165_v46 }
 0x218   :  { %169 = vadd.xlane.f32.xlu0 %v166_v47 }
 0x299   :  { %v154_v48 = vpop.xlane.xlu1 %153 }
 0x29a   :  { %338 = vlog2.f32 %v154_v48 }
 0x29d   :  { %v152_v49 = vpop.xlane.xlu0 %151 }
 0x29e   :  { %340 = vlog2.f32 %v152_v49 }
 0x2a1   :  { %v168_v50 = vpop.xlane.xlu0 %167 }
 0x2a4   :  { %v339_v51 = vpop.eup %338 }
 0x2a5   :  { %v174_v52 = vmul.f32 0.6931472, %v339_v51  ;;  %v170_v53 = vpop.xlane.xlu0 %169 }
 0x2a7   :  { %v176_v56 = vsub.f32 %v174_v52, %v170_v53 }
 0x2a8   :  { %v341_v54 = vpop.eup %340 }
 0x2a9   :  { %v172_v55 = vmul.f32 0.6931472, %v341_v54  ;;  %v190_v59 = vsel %vm188_vm4, %v176_v56, 0.0 }
 0x2ab   :  { %v175_v57 = vsub.f32 %v172_v55, %v168_v50 }
 0x2ad   :  { %v189_v58 = vsel %vm188_vm4, %v175_v57, 0.0 }
 0x2ae   :  { %v191_v60 = vadd.f32 %v190_v59, %v189_v58 }
 0x2b0   :  { %192 = vadd.xlane.f32.xlu0 %v191_v60 }
 0x2b1   :  { %375 = shalt.err (!%p372_p12)
}
 0x2b2   :  { %s376_s13 = scalar_lea.hbm %s503_s3, 256 }
 0x2b3   :  { %p377_p13 = scmp.ne.s32.totalorder %s503_s3, %s376_s13  ;;  %p380_p0 = scmp.lt.u32.totalorder %s376_s13, %s503_s3 }
 0x2b5   :  { %p382_p1 = pnand %p380_p0, %p377_p13 }
 0x2b7   :  { %385 = shalt.err (!%p382_p1)
}
 0x2b8   :  { %214 = dma.vmem_to_hbm [thread:$0]  %s209_s9, 256, %s503_s3, [#allocation4], %s415_s25, %s415_s25, %s416_s26  }
 0x2b9   :  { %s420_s20 = smov [#allocation6]  }
 0x2ba   :  { %s221_s21 = sshll.u32 %s420_s20, 4  ;;  %s222_s21 = int_to_ptr.vmem [resolvable:$true] %s221_s21 }
 0x2bb   :  { %s386_s23 = scalar_lea.vmem %s222_s21, 128  ;;  %p391_p3 = scmp.lt.s32.totalorder %s222_s21, %s222_s21 }
 0x2bc   :  { %p387_p2 = scmp.ne.s32.totalorder %s222_s21, %s386_s23  ;;  %p392_p4 = scmp.lt.s32.totalorder %s386_s23, %s386_s23 }
 0x2be   :  { %p393_p5 = por %p392_p4, %p391_p3 }
 0x2c0   :  { %p394_p6 = pnand %p393_p5, %p387_p2 }
 0x33d   :  { %v193_v61 = vpop.xlane.xlu0 %192 }
 0x33e   :  { %v194_v62 = vrot.slane %v193_v61, 4 }
 0x340   :  { %v195_v63 = vadd.f32 %v194_v62, %v193_v61 }
 0x342   :  { %v196_v0 = vrot.slane %v195_v63, 2 }
 0x344   :  { %v197_v1 = vadd.f32 %v196_v0, %v195_v63 }
 0x346   :  { %v198_v2 = vrot.slane %v197_v1, 1 }
 0x348   :  { %v199_v3 = vadd.f32 %v198_v2, %v197_v1 }
 0x34a   :  { %323 = vpush %v199_v3 }
 0x37b   :  { %s324_s22 = spop %323 }
 0x37c   :  { %v201_v4 = vstv %s324_s22 }
 0x37d   :  { %202 = vst [vmem:[#allocation6] sm:$0xff] %v201_v4 }
 0x37e   :  { %397 = shalt.err (!%p394_p6)
}
 0x37f   :  { %s398_s25 = scalar_lea.hbm %s504_s4, 128 }
 0x380   :  { %p399_p7 = scmp.ne.s32.totalorder %s504_s4, %s398_s25  ;;  %p402_p8 = scmp.lt.u32.totalorder %s398_s25, %s504_s4 }
 0x382   :  { %p404_p9 = pnand %p402_p8, %p399_p7 }
 0x384   :  { %407 = shalt.err (!%p404_p9)
}
 0x385   :  { %224 = dma.vmem_to_hbm [thread:$0]  %s222_s21, 128, %s504_s4, [#allocation7]  }
 0x386   :  { %410 = dma.done.wait [#allocation4], 256  }
 0x387   :  { %411 = vsyncadd [#allocation4], 4294967040 }
 0x388   :  { %412 = dma.done.wait [#allocation7], 128  }
 0x389   :  { %413 = vsyncadd [#allocation7], 4294967168 }
 0x38a   :  { %231 = vsyncpa [#allocation3], 1 }
 0x38b   :  { %232 = vsyncpa [#allocation4], 1 }
 0x38c   :  { %233 = vsyncpa [#allocation7], 1 }

</bundles_post_ra>
